<compile_context>
chip_gen: v7x
topology: tpu7x:2x2x1
jax: 0.10.0
libtpu: 0.0.40
codegen_flags: <defaults>
</compile_context>

<pallas_src>
import jax
import jax.numpy as jnp
from jax import lax
from jax.experimental import pallas as pl
from jax.experimental.pallas import tpu as pltpu


def rope_kernel(inv_freq_ref, x_ref, o_ref, cos_ref, sin_ref):
    """One (TS, D) sequence tile of one batch element.

    inv_freq_ref : (1, D//2) f32 — same block for every grid step (resident).
    x_ref, o_ref : (TS, D)       — batch dim squeezed away by the BlockSpec.
    cos_ref, sin_ref : (TS, D) f32 VMEM scratch, cached across the batch axis.
    """
    s_tile = pl.program_id(0)   # sequence-tile index (outer, "parallel")
    b = pl.program_id(1)        # batch index         (inner, "arbitrary")
    TS, D = o_ref.shape
    half = D // 2

    # cos/sin depend only on the sequence tile -> compute once, reuse for all b.
    @pl.when(b == 0)
    def _():
        pos = (lax.broadcasted_iota(jnp.int32, (TS, half), 0)
               + s_tile * TS).astype(jnp.float32)            # absolute positions
        freqs = pos * inv_freq_ref[...]                        # (TS, half)
        c = jnp.cos(freqs)                                     # half-width trig only
        s = jnp.sin(freqs)
        # emb = concat(freqs, freqs): duplicate the half-width cos/sin once per tile.
        cos_ref[...] = jnp.concatenate([c, c], axis=1)
        sin_ref[...] = jnp.concatenate([s, s], axis=1)

    x = x_ref[...]
    # torch.roll(x, shifts=1, dims=-1): out[..., i] = x[..., (i - 1) % D]
    x_roll = pltpu.roll(x, shift=1, axis=1)
    o_ref[...] = (x * cos_ref[...] + x_roll * sin_ref[...]).astype(o_ref.dtype)


def _choose_seq_tile(S: int, D: int, max_tile_bytes: int = 1 << 20) -> int:
    """Largest multiple-of-8 divisor of S whose f32 (TS, D) tile fits max_tile_bytes."""
    max_rows = max(8, max_tile_bytes // (D * 4))
    best = 0
    ts = 8
    while ts <= min(S, max_rows):
        if S % ts == 0:
            best = ts
        ts += 8
    return best if best > 0 else S


def rotary_position_embedding(x: jax.Array, hidden_size: int) -> jax.Array:
    """x: (B, S, D) float32.  Returns (1, B, S, D), the PyTorch broadcast result."""
    B, S, D = x.shape
    assert D == hidden_size and D % 2 == 0

    # Deterministic "buffer" init, same formula as the PyTorch __init__.
    inv_freq = 1.0 / (10000.0 ** (jnp.arange(0, D, 2, dtype=jnp.float32) / D))
    inv_freq_2d = inv_freq.reshape(1, D // 2)

    TS = _choose_seq_tile(S, D)

    grid_spec = pltpu.PrefetchScalarGridSpec(
        num_scalar_prefetch=0,
        grid=(S // TS, B),                        # seq tiles outer, batch inner
        in_specs=[
            # Constant block index -> DMA'd once, stays resident across the grid.
            pl.BlockSpec((1, D // 2), lambda s, b: (0, 0)),
            # Batch dim squeezed (None): kernel sees a clean 2-D (TS, D) tile.
            pl.BlockSpec((None, TS, D), lambda s, b: (b, s, 0)),
        ],
        out_specs=pl.BlockSpec((None, TS, D), lambda s, b: (b, s, 0)),
        scratch_shapes=[
            pltpu.VMEM((TS, D), jnp.float32),     # cos cache
            pltpu.VMEM((TS, D), jnp.float32),     # sin cache
        ],
    )

    out = pl.pallas_call(
        rope_kernel,
        out_shape=jax.ShapeDtypeStruct((B, S, D), x.dtype),
        grid_spec=grid_spec,
        compiler_params=pltpu.CompilerParams(
            # Sequence tiles shard across TensorCores (v7x megacore); batch is the
            # sequential axis the cos/sin cache is reused over.
            dimension_semantics=("parallel", "arbitrary"),
        ),
    )(inv_freq_2d, x)

    # PyTorch result shape: (1, B, S, D) from broadcasting (B,S,D) with (1,1,S,D).
    return out[None, ...]


def _reference(x: jax.Array) -> jax.Array:
    """Pure-JAX reference mirroring the PyTorch forward exactly."""
    B, S, D = x.shape
    inv_freq = 1.0 / (10000.0 ** (jnp.arange(0, D, 2, dtype=jnp.float32) / D))
    t = jnp.arange(S, dtype=jnp.float32)
    freqs = jnp.einsum("i,j->ij", t, inv_freq)
    emb = jnp.concatenate([freqs, freqs], axis=-1)
    cos = jnp.cos(emb)[None, None]        # (1,1,S,D)
    sin = jnp.sin(emb)[None, None]
    x_roll = jnp.roll(x, shift=1, axis=-1)
    return x * cos + x_roll * sin          # broadcasts to (1, B, S, D)


if __name__ == "__main__":
    # D a multiple of 128 -> full-lane (unmasked) stores; typical RoPE head dim.
    B, S, D = 2, 8, 128
    key = jax.random.PRNGKey(0)
    x = jax.random.normal(key, (B, S, D), dtype=jnp.float32)

    out = rotary_position_embedding(x, hidden_size=D)
    out = jax.block_until_ready(out)

    ref = _reference(x)
    assert out.shape == ref.shape == (1, B, S, D)
    assert jnp.allclose(out, ref, atol=1e-5, rtol=1e-5)

    print("KERNEL_OK")
</pallas_src>

<mosaic_0001>
module attributes {stable_mosaic.version = 11 : i64} {
  func.func @rope_kernel(%arg0: i32, %arg1: i32, %arg2: memref<1x64xf32, #tpu.memory_space<vmem>>, %arg3: memref<1x8x128xf32, #tpu.memory_space<vmem>>, %arg4: memref<1x8x128xf32, #tpu.memory_space<vmem>>, %arg5: memref<8x128xf32, #tpu.memory_space<vmem>>, %arg6: memref<8x128xf32, #tpu.memory_space<vmem>>) attributes {dimension_semantics = [#tpu.dimension_semantics<parallel>, #tpu.dimension_semantics<arbitrary>], iteration_bounds = array<i64: 1, 2>, scalar_prefetch = 0 : i64, scratch_operands = 2 : i64, tpu.core_type = #tpu.core_type<tc>, window_params = [{pipeline_mode = #tpu.pipeline_mode<synchronous>, transform_indices = @transform_0, window_bounds = array<i64: 1, 64>}, {transform_indices = @transform_1, window_bounds = array<i64: 1, 8, 128>}, {transform_indices = @transform_2, window_bounds = array<i64: 1, 8, 128>}]} {
    %c0_i32 = arith.constant 0 : i32
    %0 = arith.cmpi eq, %arg1, %c0_i32 : i32
    %1 = arith.extui %0 : i1 to i32
    %c0_i32_0 = arith.constant 0 : i32
    %2 = arith.cmpi ne, %1, %c0_i32_0 : i32
    scf.if %2 {
      %14 = tpu.iota {dimensions = array<i32: 0>} : vector<8x64xi32>
      %c8_i32 = arith.constant 8 : i32
      %15 = arith.muli %arg0, %c8_i32 : i32
      %16 = vector.broadcast %15 : i32 to vector<8x64xi32>
      %17 = arith.addi %14, %16 : vector<8x64xi32>
      %18 = arith.sitofp %17 : vector<8x64xi32> to vector<8x64xf32>
      %c0_10 = arith.constant 0 : index
      %c0_11 = arith.constant 0 : index
      %19 = vector.load %arg2[%c0_10, %c0_11] : memref<1x64xf32, #tpu.memory_space<vmem>>, vector<1x64xf32>
      %20 = vector.broadcast %19 : vector<1x64xf32> to vector<8x64xf32>
      %21 = arith.mulf %18, %20 : vector<8x64xf32>
      %22 = math.cos %21 : vector<8x64xf32>
      %23 = math.sin %21 : vector<8x64xf32>
      %24 = tpu.concatenate %22, %22 in 1 : vector<8x64xf32>, vector<8x64xf32> -> vector<8x128xf32>
      %c0_12 = arith.constant 0 : index
      %c0_13 = arith.constant 0 : index
      %25 = vector.load %arg5[%c0_12, %c0_13] : memref<8x128xf32, #tpu.memory_space<vmem>>, vector<8x128xf32>
      tpu.vector_store %arg5[%c0_12, %c0_13], %24 {strides = array<i32>} : memref<8x128xf32, #tpu.memory_space<vmem>>, vector<8x128xf32>,
      %26 = tpu.concatenate %23, %23 in 1 : vector<8x64xf32>, vector<8x64xf32> -> vector<8x128xf32>
      %c0_14 = arith.constant 0 : index
      %c0_15 = arith.constant 0 : index
      %27 = vector.load %arg6[%c0_14, %c0_15] : memref<8x128xf32, #tpu.memory_space<vmem>>, vector<8x128xf32>
      tpu.vector_store %arg6[%c0_14, %c0_15], %26 {strides = array<i32>} : memref<8x128xf32, #tpu.memory_space<vmem>>, vector<8x128xf32>,
    } else {
    }
    %c0 = arith.constant 0 : index
    %c0_1 = arith.constant 0 : index
    %c0_2 = arith.constant 0 : index
    %3 = vector.load %arg3[%c0, %c0_1, %c0_2] : memref<1x8x128xf32, #tpu.memory_space<vmem>>, vector<1x8x128xf32>
    %4 = vector.shape_cast %3 : vector<1x8x128xf32> to vector<8x128xf32>
    %c1_i32 = arith.constant 1 : i32
    %5 = tpu.dynamic_rotate %4 by %c1_i32 dim 1 : vector<8x128xf32>, i32 -> vector<8x128xf32>
    %c0_3 = arith.constant 0 : index
    %c0_4 = arith.constant 0 : index
    %6 = vector.load %arg5[%c0_3, %c0_4] : memref<8x128xf32, #tpu.memory_space<vmem>>, vector<8x128xf32>
    %7 = arith.mulf %4, %6 : vector<8x128xf32>
    %c0_5 = arith.constant 0 : index
    %c0_6 = arith.constant 0 : index
    %8 = vector.load %arg6[%c0_5, %c0_6] : memref<8x128xf32, #tpu.memory_space<vmem>>, vector<8x128xf32>
    %9 = arith.mulf %5, %8 : vector<8x128xf32>
    %10 = arith.addf %7, %9 : vector<8x128xf32>
    %c0_7 = arith.constant 0 : index
    %c0_8 = arith.constant 0 : index
    %c0_9 = arith.constant 0 : index
    %11 = vector.load %arg4[%c0_7, %c0_8, %c0_9] : memref<1x8x128xf32, #tpu.memory_space<vmem>>, vector<1x8x128xf32>
    %12 = vector.shape_cast %11 : vector<1x8x128xf32> to vector<8x128xf32>
    %13 = vector.shape_cast %10 : vector<8x128xf32> to vector<1x8x128xf32>
    tpu.vector_store %arg4[%c0_7, %c0_8, %c0_9], %13 {strides = array<i32>} : memref<1x8x128xf32, #tpu.memory_space<vmem>>, vector<1x8x128xf32>,
    return
  }
  func.func @transform_0(%arg0: i32, %arg1: i32) -> (i32, i32) {
    %c0_i32 = arith.constant 0 : i32
    %c0_i32_0 = arith.constant 0 : i32
    %c0_i32_1 = arith.constant 0 : i32
    return %c0_i32, %c0_i32_0 : i32, i32
  }
  func.func @transform_1(%arg0: i32, %arg1: i32) -> (i32, i32, i32) {
    %c0_i32 = arith.constant 0 : i32
    %c0_i32_0 = arith.constant 0 : i32
    return %arg1, %arg0, %c0_i32 : i32, i32, i32
  }
  func.func @transform_2(%arg0: i32, %arg1: i32) -> (i32, i32, i32) {
    %c0_i32 = arith.constant 0 : i32
    %c0_i32_0 = arith.constant 0 : i32
    return %arg1, %arg0, %c0_i32 : i32, i32, i32
  }
}

</mosaic_0001>

<bundles_post_ra>
// kernel: tpu_custom_call.1
= control target key start
LH: loop header
LB: loop body
LE: loop exit
PB: predicated region body
PF: predicated region fallthrough
CT: control target
= control target key end

     0   :  { %7 = vsyncpa [#allocation5], 0  ;;  %s1074_s0 = inlined_call_operand.hbm [shape: f32[1,64], index: 0, kind: input, shape index: {}]   ;;  %s1075_s1 = inlined_call_operand.hbm [shape: f32[2,8,128], index: 1, kind: input, shape index: {}]   ;;  %s1076_s2 = inlined_call_operand.hbm [shape: f32[2,8,128], index: 2, kind: output, shape index: {}]  }
   0x1   :  { %8 = vsyncpa [#allocation8], 0 }
   0x2   :  { %10 = vsyncpa [#allocation8 + $0x1], 0 }
   0x3   :  { %11 = vsyncpa [#allocation6], 0 }
   0x4   :  { %13 = vsyncpa [#allocation6 + $0x1], 0  ;;  %s829_s9 = smov 0   ;;  %s831_s10 = smov 0  }
   0x5   :  { %s833_s11 = smov 0   ;;  %s835_s12 = smov 0  }
   0x6   :  { %s837_s13 = smov 0   ;;  %s839_s14 = smov 0  }
   0x7 LB: > { %s543_s15 = sadd.s32 4294967295, %s801_s14   ;;  %s544_s16 = sadd.s32 4294967294, %s801_s14   ;;  %s801_s14 = sphi %s839_s14, %s19_s14   ;;  %s797_s13 = sphi %s837_s13, %s1101_s13   ;;  %s793_s12 = sphi %s835_s12, %s1100_s12   ;;  %s789_s11 = sphi %s833_s11, %s1099_s11   ;;  %s785_s10 = sphi %s831_s10, %s1098_s10   ;;  %s781_s9 = sphi %s829_s9, %s1097_s9  }
   0x8   : > { %p74_p0 = scmp.ne.s32.totalorder %s785_s10, %s781_s9  ;;  %p863_p1 = scmp.eq.s32.totalorder %s543_s15, 0 }
   0x9   : > { %p867_p2 = scmp.eq.s32.totalorder %s543_s15, 1  ;;  %p106_p3 = scmp.eq.s32.totalorder %s544_s16, 1 }
   0xa   : > { %s1081_s17 = scalar_select %p863_p1, 1, 0 }
   0xb   : > { %s1082_s18 = scalar_select %p867_p2, 1, 0 }
   0xc   : > { %p873_p4 = por %p863_p1, %p74_p0  ;;  %p545_p5 = scmp.ge.s32.totalorder %s801_s14, 1 }
   0xd   : > { %p878_p6 = por %p106_p3, %p74_p0  ;;  %p113_p7 = scmp.lt.s32.totalorder %s801_s14, 3 }
   0xe   : > { %s1083_s19 = scalar_select %p873_p4, 1, 0 }
   0xf   : > { %s1084_s20 = scalar_select %p878_p6, 1, 0 }
  0x10   : > { %p883_p8 = pnand %p545_p5, %p113_p7  ;;  %s803_s22 = smov [#allocation4]  }
  0x11   : > { %s126_s23 = sshll.u32 %s803_s22, 4  ;;  %s28_s25 = sadd.s32 1, %s797_s13  ;;  %s127_s23 = int_to_ptr.vmem [resolvable:$true] %s126_s23 }
  0x12   : > { %s1085_s21 = scalar_select %p883_p8, 1, 0 }
  0x13   : > { %p580_p10 = pneg %p883_p8  ;;  %s61_s26 = sadd.s32 1, %s789_s11 }
  0x14   : > { %p898_p12 = scmp.ge.s32.totalorder %s28_s25, 2  ;;  %s657_s30 = scalar_lea.hbm %s1074_s0, 16 }
  0x15   : > { %p892_p11 = pnand %p580_p10, %p863_p1  ;;  %p658_p13 = scmp.ne.s32.totalorder %s1074_s0, %s657_s30 }
  0x16   : > { %s1087_s27 = scalar_select %p898_p12, 1, 0 }
  0x17   : > { %p659_p0 = pneg %p892_p11  ;;  %p664_p7 = scmp.lt.u32.totalorder %s657_s30, %s1074_s0 }
  0x19   : > { %p660_p3 = pnand %p659_p0, %p658_p13 }
  0x1b   : > { %p661_p5 = pneg %p660_p3 }
  0x1d   : > { %p666_p10 = pnand %p664_p7, %p661_p5 }
  0x1f   : > { %669 = shalt.err (!%p666_p10)
}
  0x20   : > { %s670_s7 = scalar_lea.vmem %s127_s23, 16  ;;  %s677_s8 = scalar_lea.vmem %s127_s23, 32 }
  0x21   : > { %p671_p9 = scmp.ne.s32.totalorder %s127_s23, %s670_s7  ;;  %p678_p1 = scmp.lt.s32.totalorder %s127_s23, %s127_s23 }
  0x22   : > { %p679_p8 = scmp.lt.s32.totalorder %s677_s8, %s670_s7 }
  0x23   : > { %p673_p6 = pnand %p671_p9, %p659_p0 }
  0x24   : > { %p680_p2 = por %p679_p8, %p678_p1 }
  0x25   : > { %p674_p4 = pneg %p673_p6 }
  0x27   : > { %p681_p12 = pnand %p680_p2, %p674_p4 }
  0x29   : > { %684 = shalt.err (!%p681_p12)
}
  0x2a   : > { %583 = dma.hbm_to_vmem [thread:$0]  (!%p892_p11), %s1074_s0, 16, %s127_s23, [#allocation5]  }
  0x2b   : > { %p1088_p1 = scmp.ne.s32.totalorder %s1087_s27, 0  ;;  %p68_p2 = scmp.ne.s32.totalorder %s789_s11, %s785_s10 }
  0x2c   : > { %p69_p4 = scmp.eq.s32.totalorder %s801_s14, 0  ;;  %p593_p6 = scmp.lt.s32.totalorder %s801_s14, 2 }
  0x2d   : > { %s1103_s25 = smov (%p1088_p1, %s28_s25), 0  ;;  %p1089_p12 = scmp.ne.s32.totalorder %s1082_s18, 0 }
  0x2e   : > { %s56_s22 = ssub.s32 %s797_s13, %s1103_s25  ;;  %p70_p9 = por %p69_p4, %p68_p2 }
  0x2f   : > { %p59_p8 = scmp.eq.s32.totalorder %s56_s22, 0  ;;  %p930_p13 = por %p1089_p12, %p68_p2 }
  0x30   : > { %s137_s28 = sand.u32 1, %s789_s11   ;;  %s549_s27 = sshll.u32 %s797_s13, 7 }
  0x31   : > { %s938_s29 = scalar_select %p59_p8, %s789_s11, %s61_s26  }
  0x32   : > { %s548_s23 = sshll.u32 %s137_s28, 3  ;;  %s944_s4 = scalar_lea.hbm %s1075_s1, %s549_s27 }
  0x33   : > { %s141_s18 = scalar_lea.vmem [#allocation7], %s548_s23  ;;  %p948_p11 = pnand %p593_p6, %p70_p9 }
  0x34   : > { %s149_s5 = sshll.u32 %s141_s18, 4  ;;  %s138_s26 = scalar_lea.sflag [#allocation8], %s137_s28  ;;  %s946_s5 = int_to_ptr.vmem [resolvable:$true] %s149_s5 }
  0x35   : > { %s685_s7 = scalar_lea.hbm %s944_s4, 128  ;;  %p687_p3 = pneg %p948_p11 }
  0x36   : > { %p686_p0 = scmp.ne.s32.totalorder %s944_s4, %s685_s7  ;;  %s690_s16 = scalar_lea.hbm %s1075_s1, 256 }
  0x37   : > { %p691_p10 = scmp.lt.u32.totalorder %s944_s4, %s1075_s1  ;;  %p692_p1 = scmp.lt.u32.totalorder %s690_s16, %s685_s7 }
  0x38   : > { %p688_p5 = pnand %p687_p3, %p686_p0  ;;  %p694_p4 = scmp.lt.u32.totalorder %s685_s7, %s944_s4 }
  0x39   : > { %p693_p2 = por %p692_p1, %p691_p10 }
  0x3a   : > { %p689_p7 = pneg %p688_p5 }
  0x3b   : > { %p695_p6 = por %p694_p4, %p693_p2 }
  0x3d   : > { %p696_p8 = pnand %p695_p6, %p689_p7 }
  0x3f   : > { %699 = shalt.err (!%p696_p8)
}
  0x40   : > { %s700_s28 = scalar_lea.vmem %s946_s5, 128  ;;  %s804_s27 = smov [#allocation7]  }
  0x41   : > { %p701_p9 = scmp.ne.s32.totalorder %s946_s5, %s700_s28  ;;  %s705_s30 = sshll.u32 %s804_s27, 4  ;;  %s706_s30 = int_to_ptr.vmem [resolvable:$false] %s705_s30 }
  0x42   : > { %s707_s3 = scalar_lea.vmem %s706_s30, 256  ;;  %p708_p5 = scmp.lt.s32.totalorder %s946_s5, %s706_s30 }
  0x43   : > { %p703_p12 = pnand %p701_p9, %p687_p3  ;;  %p709_p10 = scmp.lt.s32.totalorder %s707_s3, %s700_s28 }
  0x45   : > { %p704_p0 = pneg %p703_p12  ;;  %p710_p1 = por %p709_p10, %p708_p5 }
  0x47   : > { %p711_p2 = pnand %p710_p1, %p704_p0 }
  0x49   : > { %714 = shalt.err (!%p711_p2)
}
  0x4a   : > { %587 = dma.hbm_to_vmem [thread:$0]  (!%p948_p11), %s944_s4, 128, %s946_s5, %s138_s26  }
  0x4b   : > { %p1092_p7 = scmp.ne.s32.totalorder %s1085_s21, 0 }
  0x4c   : > { %p1093_p3 = scmp.ne.s32.totalorder (!%p1092_p7), %s1081_s17, 0 }
  0x4d   : > { %158 = sbr.rel (%p1092_p7) target bundleno = 433 (0x1b1), region = 28 }
  0x54   : > { %768 = dma.done.wait (%p1093_p3), [#allocation5], 16  }
  0x55   : > { %770 = vsyncadd (%p1093_p3), [#allocation5], 4294967280  ;;  %s984_s18 = sand.u32 1, %s785_s10   ;;  %p1094_p11 = scmp.ne.s32.totalorder %s1083_s19, 0 }
  0x56   : > { %s552_s7 = sshll.u32 %s984_s18, 3  ;;  %s165_s6 = scalar_lea.sflag [#allocation8], %s984_s18 }
  0x57   : > { %s988_s8 = scalar_lea.vmem [#allocation7], %s552_s7 }
  0x58   : > { %772 = dma.done.wait (%p1094_p11), %s165_s6, 128  }
  0x59   : > { %774 = vsyncadd (%p1094_p11), %s165_s6, 4294967168  ;;  %s994_s21 = scalar_lea.vmem [#allocation9], %s552_s7  ;;  %p554_p4 = scmp.ne.s32.totalorder %s793_s12, 0 }
  0x5a   : > { %v193_v0 = vlaneseq (!%p554_p4)  ;;  %v555_v2 = vld [vmem:[#allocation4] ss:$0 sm:$0xff] (!%p554_p4)  ;;  %v805_v16 = vmov (!%p554_p4), 683565275   ;;  %v806_v18 = vmov (!%p554_p4), 2475754826  }
  0x5b   : > { %192 = sbr.rel (%p554_p4) target bundleno = 299 (0x12b), region = 40  ;;  %v807_v20 = vmov (!%p554_p4), 2131351028   ;;  %v808_v22 = vmov (!%p554_p4), 2102212464   ;;  %s811_s17 = smov (!%p554_p4), 64  }
  0x5c   : > { %v194_v1 = vshrl.u32 (!%p554_p4), %v193_v0, 7  ;;  %v809_v24 = vmov (!%p554_p4), 920167782   ;;  %v810_v31 = vmov (!%p554_p4), 1326507024  }
  0x5e   : > { %v198_v3 = vcvt.s32.f32 (!%p554_p4), %v194_v1 }
  0x60   : > { %v997_v4 = vmul.f32 (!%p554_p4), %v555_v2, %v198_v3 }
  0x62   : > { %v210_v5 = vand.u32 2139095040, %v997_v4  ;;  %v207_v7 = vand.u32 2147483647, %v997_v4  ;;  %vm209_vm7 = vcmp.lt.s32.totalorder %v997_v4, 0  ;;  %vm299_vm15 = vweird.f32 %v997_v4 }
  0x64   : > { %v211_v6 = vshrl.u32 %v210_v5, 23  ;;  %v214_v10 = vand.u32 8388607, %v207_v7  ;;  %vm208_vm8 = vcmp.le.f32.partialorder %v207_v7, 0.7853982 }
  0x66   : > { %v556_v8 = vadd.s32 4294967169, %v211_v6  ;;  %v215_v13 = vor.u32 8388608, %v214_v10 }
  0x68   : > { %v217_v9 = vadd.s32 1, %v556_v8  ;;  %v255_v33 = vshll.u32 %v215_v13, 8 }
  0x6a   : > { %vm218_vm0 = vcmp.gt.s32.totalorder %v217_v9, 0 }
  0x6b   : > { %v219_v11 = vsel %vm218_vm0, %v217_v9, 0  ;;  %vm418_vm0 = vcmask 523264  }
  0x6c   : > { %v221_v12 = vand.u32 31, %v219_v11  ;;  %v220_v14 = vshrl.u32 %v219_v11, 5 }
  0x6e   : > { %v222_v15 = vsub.s32 32, %v221_v12  ;;  %v224_v17 = vshll.u32 %v805_v16, %v221_v12  ;;  %v227_v19 = vshll.u32 %v806_v18, %v221_v12  ;;  %v230_v21 = vshll.u32 %v807_v20, %v221_v12 }
  0x6f   : > { %v233_v23 = vshll.u32 %v808_v22, %v221_v12  ;;  %v236_v25 = vshll.u32 %v809_v24, %v221_v12  ;;  %vm239_vm1 = vcmp.lt.s32.totalorder %v220_v14, 1  ;;  %vm242_vm2 = vcmp.lt.s32.totalorder %v220_v14, 4 }
  0x70   : > { %v223_v26 = vshrl.u32 %v805_v16, %v222_v15  ;;  %v225_v27 = vshrl.u32 %v806_v18, %v222_v15  ;;  %v228_v28 = vshrl.u32 %v807_v20, %v222_v15  ;;  %v231_v29 = vshrl.u32 %v808_v22, %v222_v15 }
  0x71   : > { %v234_v30 = vshrl.u32 %v809_v24, %v222_v15  ;;  %v237_v32 = vshrl.u32 %v810_v31, %v222_v15  ;;  %vm240_vm3 = vcmp.lt.s32.totalorder %v220_v14, 2  ;;  %vm241_vm4 = vcmp.lt.s32.totalorder %v220_v14, 3 }
  0x72   : > { %v226_v34 = vor.u32 %v225_v27, %v224_v17  ;;  %v229_v35 = vor.u32 %v228_v28, %v227_v19  ;;  %v232_v36 = vor.u32 %v231_v29, %v230_v21 }
  0x73   : > { %v235_v37 = vor.u32 %v234_v30, %v233_v23  ;;  %v238_v38 = vor.u32 %v237_v32, %v236_v25 }
  0x74   : > { %v243_v39 = vsel %vm239_vm1, %v223_v26, %v226_v34  ;;  %v244_v40 = vsel %vm242_vm2, %v232_v36, 2102212464  ;;  %v247_v41 = vsel %vm239_vm1, %v226_v34, %v229_v35  ;;  %v251_v42 = vsel %vm239_vm1, %v229_v35, %v232_v36 }
  0x75   : > { %v245_v43 = vsel %vm241_vm4, %v229_v35, %v244_v40  ;;  %v248_v44 = vsel %vm242_vm2, %v235_v37, 920167782  ;;  %v252_v45 = vsel %vm242_vm2, %v238_v38, 1326507024 }
  0x76   : > { %v249_v46 = vsel %vm241_vm4, %v232_v36, %v248_v44  ;;  %v253_v47 = vsel %vm241_vm4, %v235_v37, %v252_v45  ;;  %v246_v48 = vsel %vm240_vm3, %v243_v39, %v245_v43 }
  0x77   : > { %v250_v49 = vsel %vm240_vm3, %v247_v41, %v249_v46  ;;  %v254_v50 = vsel %vm240_vm3, %v251_v42, %v253_v47  ;;  %v262_v55 = vmul.u32 %v255_v33, %v246_v48 }
  0x78   : > { %v1003_v51 = vmul.u32.u64.low %v255_v33, %v254_v50  ;;  %v1004_v52 = vmul.u32.u64.high %v255_v33, %v254_v50, %v1003_v51  ;;  %v1006_v53 = vmul.u32.u64.low %v255_v33, %v250_v49  ;;  %v1007_v54 = vmul.u32.u64.high %v255_v33, %v250_v49, %v1006_v53 }
  0x7a   : > { %vm264_vm5 = vc.u32 %v1004_v52, %v1006_v53  ;;  %v265_v56 = vadd.s32 1, %v1007_v54  ;;  %v263_v3 = vadd.s32 %v1006_v53, %v1004_v52 }
  0x7c   : > { %v266_v57 = vsel %vm264_vm5, %v265_v56, %v1007_v54 }
  0x7d   : > { %v267_v58 = vadd.s32 %v266_v57, %v262_v55 }
  0x7f   : > { %v268_v59 = vadd.s32 536870912, %v267_v58 }
  0x81   : > { %v269_v60 = vshrl.u32 %v268_v59, 30 }
  0x83   : > { %v270_v61 = vshll.u32 %v269_v60, 30  ;;  %v293_v18 = vsub.s32 4, %v269_v60 }
  0x85   : > { %v271_v62 = vsub.s32 %v267_v58, %v270_v61  ;;  %v294_v21 = vsel %vm209_vm7, %v293_v18, %v269_v60 }
  0x86   : > { %v296_v23 = vsel %vm208_vm8, 0, %v294_v21 }
  0x87   : > { %v273_v63 = vsub.s32 0, %v271_v62  ;;  %v403_v24 = vadd.s32 3, %v296_v23  ;;  %v300_v25 = vand.u32 3, %v296_v23 }
  0x89   : > { %v557_v0 = vmin.u32 %v273_v63, %v271_v62  ;;  %v404_v26 = vand.u32 3, %v403_v24  ;;  %vm305_vm9 = vcmp.eq.s32.totalorder %v300_v25, 2  ;;  %vm302_vm11 = vcmp.eq.s32.totalorder %v300_v25, 0 }
  0x8a   : > { %vm301_vm13 = vcmp.lt.s32.totalorder %v300_v25, 2 }
  0x8b   : > { %v275_v1 = vclz %v557_v0  ;;  %vm409_vm10 = vcmp.eq.s32.totalorder %v404_v26, 2  ;;  %vm406_vm12 = vcmp.eq.s32.totalorder %v404_v26, 0  ;;  %vm405_vm14 = vcmp.lt.s32.totalorder %v404_v26, 2 }
  0x8d   : > { %v558_v2 = vadd.s32 4294967294, %v275_v1 }
  0x8f   : > { %vm559_vm6 = vcmp.lt.s32.totalorder %v558_v2, 0 }
  0x90   : > { %v278_v5 = vsel %vm559_vm6, 0, %v558_v2 }
  0x91   : > { %v279_v6 = vsub.s32 32, %v278_v5  ;;  %v280_v8 = vshll.u32 %v271_v62, %v278_v5  ;;  %v283_v9 = vsub.s32 4294967266, %v278_v5 }
  0x93   : > { %v281_v10 = vshrl.u32 %v263_v3, %v279_v6  ;;  %v284_v11 = vadd.s32 127, %v283_v9 }
  0x95   : > { %v282_v12 = vor.u32 %v281_v10, %v280_v8  ;;  %v285_v13 = vshll.u32 %v284_v11, 23 }
  0x97   : > { %v286_v14 = vor.u32 4788187, %v285_v13  ;;  %v289_v15 = vcvt.s32.f32 %v282_v12 }
  0x99   : > { %v287_v16 = vand.u32 2147483647, %v286_v14 }
  0x9b   : > { %v290_v17 = vmul.f32 %v289_v15, %v287_v16 }
  0x9d   : > { %v291_v19 = vxor.u32 2147483648, %v290_v17 }
  0x9f   : > { %v292_v20 = vsel %vm209_vm7, %v291_v19, %v290_v17 }
  0xa0   : > { %v295_v22 = vsel %vm208_vm8, %v997_v4, %v292_v20 }
  0xa1   : > { %653 = vcosq.f32 %v295_v22 }
  0xa2   : > { %655 = vsinq.f32 %v295_v22 }
  0xab   : > { %v654_v27 = vpop.eup %653 }
  0xac   : > { %v656_v28 = vpop.eup %655  ;;  %v306_v29 = vxor.u32 2147483648, %v654_v27 }
  0xad   : > { %v303_v7 = vxor.u32 2147483648, %v656_v28 }
  0xae   : > { %v307_v30 = vsel %vm305_vm9, %v306_v29, %v656_v28  ;;  %v411_v31 = vsel %vm409_vm10, %v306_v29, %v656_v28 }
  0xaf   : > { %v304_v32 = vsel %vm302_vm11, %v654_v27, %v303_v7  ;;  %v408_v33 = vsel %vm406_vm12, %v654_v27, %v303_v7 }
  0xb0   : > { %v308_v34 = vsel %vm301_vm13, %v304_v32, %v307_v30  ;;  %v412_v35 = vsel %vm405_vm14, %v408_v33, %v411_v31 }
  0xb1   : > { %v309_v36 = vsel %vm299_vm15, nan, %v308_v34  ;;  %v413_v37 = vsel %vm299_vm15, nan, %v412_v35 }
  0xb2   : > { %415 = vrot.lane.b32.xlu0 %v309_v36, %s811_s17 }
  0xb6   : > { %422 = vrot.lane.b32.xlu0 %v413_v37, %s811_s17 }
 0x124   : > { %v416_v38 = vpop.permute.xlu0 %415 }
 0x125   : > { %v419_v39 = vsel %vm418_vm0, %v309_v36, %v416_v38 }
 0x126   : > { %420 = vst [vmem:[#allocation2] sm:$0xff] %v419_v39 }
 0x128   : > { %v423_v40 = vpop.permute.xlu0 %422 }
 0x129   : > { %v425_v41 = vsel %vm418_vm0, %v413_v37, %v423_v40 }
 0x12a   : > { %426 = vst [vmem:[#allocation3] sm:$0xff] %v425_v41 }
 0x12b PF: > { %v427_v4 = vld [vmem:[%s988_s8] sm:$0xff]  ;;  %s812_s19 = smov 1   ;;  %s565_s4 = sshll.u32 %s793_s12, 7 }
 0x12c   : > { %428 = vrot.lane.b32.xlu0 %v427_v4, %s812_s19  ;;  %s451_s5 = sshll.u32 %s994_s21, 4  ;;  %s1024_s16 = scalar_lea.hbm %s1076_s2, %s565_s4  ;;  %s1026_s5 = int_to_ptr.vmem [resolvable:$true] %s451_s5 }
 0x12d   : > { %v430_v42 = vld [vmem:[#allocation2] sm:$0xff]  ;;  %s437_s22 = scalar_lea.sflag [#allocation6], %s984_s18  ;;  %s715_s23 = scalar_lea.vmem %s1026_s5, 128 }
 0x12e   : > { %v431_v44 = vmul.f32 %v430_v42, %v427_v4  ;;  %p716_p6 = scmp.ne.s32.totalorder %s1026_s5, %s715_s23  ;;  %s813_s12 = smov [#allocation9]  }
 0x12f   : > { %s719_s28 = sshll.u32 %s813_s12, 4  ;;  %s720_s28 = int_to_ptr.vmem [resolvable:$false] %s719_s28 }
 0x130   : > { %p717_p8 = pnand %p716_p6, %p930_p13  ;;  %s721_s27 = scalar_lea.vmem %s720_s28, 256 }
 0x131   : > { %v432_v43 = vld [vmem:[#allocation3] sm:$0xff]  ;;  %p722_p12 = scmp.lt.s32.totalorder %s1026_s5, %s720_s28  ;;  %p723_p0 = scmp.lt.s32.totalorder %s721_s27, %s715_s23 }
 0x132   : > { %p718_p9 = pneg %p717_p8 }
 0x133   : > { %p724_p5 = por %p723_p0, %p722_p12 }
 0x135   : > { %p725_p10 = pnand %p724_p5, %p718_p9 }
 0x19e   : > { %v429_v45 = vpop.permute.xlu0 %428 }
 0x19f   : > { %v433_v46 = vmul.f32 %v432_v43, %v429_v45 }
 0x1a1   : > { %v434_v47 = vadd.f32 %v433_v46, %v431_v44 }
 0x1a3   : > { %435 = vst [vmem:[%s994_s21] sm:$0xff] %v434_v47 }
 0x1a4   : > { %728 = shalt.err (!%p725_p10)
}
 0x1a5   : > { %s729_s30 = scalar_lea.hbm %s1024_s16, 128  ;;  %s733_s7 = scalar_lea.hbm %s1076_s2, 256 }
 0x1a6   : > { %p730_p1 = scmp.ne.s32.totalorder %s1024_s16, %s729_s30  ;;  %p734_p3 = scmp.lt.u32.totalorder %s1024_s16, %s1076_s2 }
 0x1a7   : > { %p735_p11 = scmp.lt.u32.totalorder %s733_s7, %s729_s30  ;;  %p737_p6 = scmp.lt.u32.totalorder %s729_s30, %s1024_s16 }
 0x1a8   : > { %p731_p2 = pnand %p730_p1, %p930_p13 }
 0x1a9   : > { %p736_p4 = por %p735_p11, %p734_p3 }
 0x1aa   : > { %p732_p7 = pneg %p731_p2 }
 0x1ab   : > { %p738_p8 = por %p737_p6, %p736_p4 }
 0x1ad   : > { %p739_p9 = pnand %p738_p8, %p732_p7 }
 0x1af   : > { %742 = shalt.err (!%p739_p9)
}
 0x1b0   : > { %578 = dma.vmem_to_hbm [thread:$0]  (%p930_p13), %s1026_s5, 128, %s1024_s16, %s437_s22  }
 0x1b1 PF: > { %s463_s21 = sand.u32 1, %s781_s9   ;;  %p1095_p12 = scmp.ne.s32.totalorder %s1084_s20, 0 }
 0x1b2   : > { %p1096_p0 = scmp.ge.s32.totalorder %s801_s14, 2  ;;  %s464_s17 = scalar_lea.sflag [#allocation6], %s463_s21 }
 0x1b4   : > { %p589_p5 = pnand %p1096_p0, %p1095_p12 }
 0x1b6   : > { %776 = dma.done.wait (!%p589_p5), %s464_s17, 128  }
 0x1b7   : > { %778 = vsyncadd (!%p589_p5), %s464_s17, 4294967168  ;;  %s19_s14 = sadd.s32 1, %s801_s14   ;;  %s1097_s9 = smov %s785_s10 }
 0x1b8   : > { %p16_p10 = scmp.ge.s32.totalorder %s19_s14, 4   ;;  %s1098_s10 = smov %s789_s11 }
 0x1b9   : > { %s1099_s11 = smov %s938_s29  ;;  %s1100_s12 = smov %s797_s13 }
 0x1ba   : > { %s1101_s13 = smov %s1103_s25  ;;  %18 = sbr.rel (!%p16_p10) target bundleno = 7 (0x7), region = 82 }
 0x1c1   :  { %469 = vsyncpa [#allocation5], 1 }
 0x1c2   :  { %471 = vsyncpa [#allocation5 + $0x1], 1 }
 0x1c3   :  { %472 = vsyncpa [#allocation8], 1 }
 0x1c4   :  { %474 = vsyncpa [#allocation8 + $0x1], 1 }
 0x1c5   :  { %475 = vsyncpa [#allocation6], 1 }
 0x1c6   :  { %477 = vsyncpa [#allocation6 + $0x1], 1 }

</bundles_post_ra>
